<compile_context>
chip_gen: v6e
topology: v6e:2x2x1
jax: 0.10.0
libtpu: 0.0.40
codegen_flags: <defaults>
</compile_context>

<pallas_src>
from functools import partial

import jax
import jax.numpy as jnp
from jax import lax
from jax.experimental import pallas as pl
from jax.experimental.pallas import tpu as pltpu


# ----------------------------- Pallas kernel -------------------------------

def _head_kernel(x_ref, w_ref, b_ref, o_ref, *, compute_dtype):
    # x_ref: (tn, D)  token tile in its incoming dtype (batch dim squeezed)
    # w_ref: (C, D)   full weight (PyTorch nn.Linear layout), resident
    # b_ref: (C, 1)   bias column, f32, resident
    # o_ref: (C, tn)  lane-dense output tile (tokens on the 128-lane axis)
    x = x_ref[...]
    w = w_ref[...]
    if compute_dtype is not None:
        x = x.astype(compute_dtype)   # cast in VMEM, not via an extra HBM pass
        w = w.astype(compute_dtype)   # no-op: weight already hoisted to bf16
    acc = lax.dot_general(
        w, x,
        dimension_numbers=(((1,), (1,)), ((), ())),   # contract over D -> (C, tn)
        preferred_element_type=jnp.float32)
    o_ref[...] = (acc + b_ref[...]).astype(o_ref.dtype)


# ------------------------- VMEM-aware tile sizing ---------------------------

def _vmem_capacity_bytes():
    """Physical VMEM per TensorCore, with a conservative (v7x) fallback."""
    try:
        cap = getattr(pltpu.get_tpu_info(), "vmem_capacity_bytes", None)
        if cap:
            return int(cap)
    except Exception:
        pass
    return 64 << 20


def _pick_token_tile(n_tokens, batch, d_enc, n_cls, x_bytes, w_bytes,
                     out_bytes, budget_bytes, max_tile=8192):
    """Largest lane-aligned token tile whose double-buffered working set fits."""
    c_pad = max(8, ((n_cls + 7) // 8) * 8)
    # Resident weight + bias (counted double-buffered, to be safe) come out of
    # the budget before sizing the streamed tiles.
    budget = budget_bytes - 2 * c_pad * d_enc * w_bytes - 2 * c_pad * 128 * 4
    per_tok = 2 * d_enc * x_bytes + 2 * c_pad * out_bytes   # x + out, 2 buffers each
    tn = max(1, budget // per_tok)
    tn = min(tn, max_tile)
    if tn >= n_tokens:
        if batch == 1 and n_tokens >= 256:
            # Keep >=2 grid steps so both v7x TensorCores get work.
            return max(128, ((n_tokens // 2) // 128) * 128)
        return n_tokens                         # full-extent block, always legal
    # tn < n_tokens: output lane axis must be a multiple of 128.
    return min(max(128, (tn // 128) * 128), n_tokens)


# ------------------------------ Linear head ---------------------------------

@partial(jax.jit, static_argnames=("compute_dtype", "out_dtype", "tile_override"))
def linear_head_bcn(x, weight, bias, *, compute_dtype=jnp.bfloat16,
                    out_dtype=jnp.float32, tile_override=None):
    """x: (B, N, D), weight: (C, D), bias: (C,)  ->  y: (B, C, N) lane-dense."""
    B, N, D = x.shape
    C = weight.shape[0]

    vmem_cap = _vmem_capacity_bytes()
    # v7x (64 MiB/TC) -> ~54 MiB limit; v5e/v6e (128 MiB) -> 100 MiB limit.
    vmem_limit = min(int(vmem_cap * 0.85), 100 << 20)
    budget = int(vmem_limit * 0.8)

    if tile_override is not None:
        tn = min(int(tile_override), N)
    else:
        tn = _pick_token_tile(N, B, D, C,
                              x.dtype.itemsize, weight.dtype.itemsize,
                              jnp.dtype(out_dtype).itemsize, budget)

    bias_col = bias.astype(jnp.float32).reshape(C, 1)
    grid = (B, pl.cdiv(N, tn))   # ragged last tile handled by Pallas edge blocks

    return pl.pallas_call(
        partial(_head_kernel, compute_dtype=compute_dtype),
        out_shape=jax.ShapeDtypeStruct((B, C, N), out_dtype),
        grid=grid,
        in_specs=[
            pl.BlockSpec((None, tn, D), lambda b, i: (b, i, 0)),   # streamed tokens
            pl.BlockSpec((C, D), lambda b, i: (0, 0)),             # resident weight
            pl.BlockSpec((C, 1), lambda b, i: (0, 0)),             # resident bias
        ],
        out_specs=pl.BlockSpec((None, C, tn), lambda b, i: (b, 0, i)),
        compiler_params=pltpu.CompilerParams(
            dimension_semantics=("parallel", "parallel"),
            vmem_limit_bytes=vmem_limit,
        ),
    )(x, weight, bias_col)


# ----------------------------- Module wrapper -------------------------------

class DecoderLinear:
    def __init__(self, n_cls, patch_size, d_encoder, n_layers, key,
                 compute_dtype=jnp.bfloat16, out_dtype=jnp.float32):
        self.n_cls = n_cls
        self.patch_size = patch_size
        self.d_encoder = d_encoder
        self.n_layers = n_layers
        self.compute_dtype = compute_dtype
        self.out_dtype = out_dtype
        # trunc_normal_(std=0.02) on the Linear weight; bias = 0.
        # Weight kept in PyTorch nn.Linear layout (out_features, in_features).
        w = jax.random.truncated_normal(
            key, -2.0, 2.0, (n_cls, d_encoder), dtype=jnp.float32) * 0.02
        self.weight = w                                    # (C, D_enc) f32 master
        self.bias = jnp.zeros((n_cls,), dtype=jnp.float32)
        # Hoisted compute-dtype copy of the (tiny) weight: cast once, not per call.
        self.weight_c = w.astype(compute_dtype) if compute_dtype is not None else w

    def __call__(self, x, im_size):
        # x: (B, N, D_enc);  im_size = (D, H, W) of the original volume.
        Dim, Him, Wim = im_size
        GS = Dim // self.patch_size // 2 ** (self.n_layers - 1)
        WS = Him // self.patch_size // 2 ** (self.n_layers - 1)
        B, N, Denc = x.shape
        assert Denc == self.d_encoder
        assert N % (GS * WS) == 0
        w_tok = N // (GS * WS)

        # Hot path: linear head via Pallas, produced directly in (B, C, N).
        y = linear_head_bcn(x, self.weight_c, self.bias,
                            compute_dtype=self.compute_dtype,
                            out_dtype=self.out_dtype)
        # 'b c (d h w) -> b c d h w' : pure reshape (transpose was absorbed
        # into the kernel's lane-dense output layout).
        return y.reshape(B, self.n_cls, GS, WS, w_tok)


# ------------------------------- Reference ----------------------------------

def reference_forward(x, weight, bias, im_size, patch_size, n_layers, n_cls):
    Dim, Him, Wim = im_size
    GS = Dim // patch_size // 2 ** (n_layers - 1)
    WS = Him // patch_size // 2 ** (n_layers - 1)
    B, N, _ = x.shape
    w_tok = N // (GS * WS)
    y = jnp.einsum("bnd,cd->bnc", x, weight) + bias
    y = y.reshape(B, GS, WS, w_tok, n_cls)
    return jnp.transpose(y, (0, 4, 1, 2, 3))


# --------------------------------- Main --------------------------------------

if __name__ == "__main__":
    key = jax.random.PRNGKey(0)
    k_param, k_x, k_x2 = jax.random.split(key, 3)

    # Small, self-consistent config.
    n_cls = 8
    patch_size = 2
    d_encoder = 32
    n_layers = 2
    im_size = (16, 16, 16)                                    # (D, H, W)
    GS = im_size[0] // patch_size // 2 ** (n_layers - 1)      # 4
    WS = im_size[1] // patch_size // 2 ** (n_layers - 1)      # 4
    w_tok = im_size[2] // patch_size // 2 ** (n_layers - 1)   # 4
    B = 2
    N = GS * WS * w_tok                                       # 64 tokens

    model = DecoderLinear(n_cls, patch_size, d_encoder, n_layers, k_param)
    x = jax.random.normal(k_x, (B, N, d_encoder), dtype=jnp.float32)

    out = jax.block_until_ready(model(x, im_size))

    # References: tight check against a bf16-input emulation (matches the
    # kernel's in-kernel bf16 casts / f32 accumulation), loose vs f32.
    ref_bf16 = reference_forward(
        x.astype(jnp.bfloat16).astype(jnp.float32),
        model.weight.astype(jnp.bfloat16).astype(jnp.float32),
        model.bias, im_size, patch_size, n_layers, n_cls)
    ref_f32 = reference_forward(x, model.weight, model.bias, im_size,
                                patch_size, n_layers, n_cls)

    assert out.shape == (B, n_cls, GS, WS, w_tok), out.shape
    assert jnp.allclose(out, ref_bf16, atol=1e-4, rtol=1e-4), "mismatch vs bf16 ref"
    assert jnp.allclose(out, ref_f32, atol=1e-2, rtol=5e-2), "mismatch vs f32 ref"

    # Exercise the ragged-edge / multi-tile path (no pad, masked OOB stores):
    # N2 = 200 with a forced 128-token tile -> grid (B, 2), last block partial.
    N2 = 200
    x2 = jax.random.normal(k_x2, (B, N2, d_encoder), dtype=jnp.float32)
    y2 = jax.block_until_ready(
        linear_head_bcn(x2, model.weight_c, model.bias, tile_override=128))
    ref2 = jnp.einsum("bnd,cd->bnc",
                      x2.astype(jnp.bfloat16).astype(jnp.float32),
                      model.weight.astype(jnp.bfloat16).astype(jnp.float32)
                      ) + model.bias
    ref2 = jnp.transpose(ref2, (0, 2, 1))
    assert y2.shape == (B, n_cls, N2), y2.shape
    assert jnp.allclose(y2, ref2, atol=1e-4, rtol=1e-4), "mismatch on ragged tiles"

    print("KERNEL_OK")
</pallas_src>

<mosaic_0001>
module attributes {stable_mosaic.version = 11 : i64} {
  func.func @_head_kernel(%arg0: i32, %arg1: i32, %arg2: memref<1x64x32xf32, #tpu.memory_space<vmem>>, %arg3: memref<8x32xbf16, #tpu.memory_space<vmem>>, %arg4: memref<8x1xf32, #tpu.memory_space<vmem>>, %arg5: memref<1x8x64xf32, #tpu.memory_space<vmem>>) attributes {dimension_semantics = [#tpu.dimension_semantics<parallel>, #tpu.dimension_semantics<parallel>], iteration_bounds = array<i64: 2, 1>, scalar_prefetch = 0 : i64, scratch_operands = 0 : i64, tpu.core_type = #tpu.core_type<tc>, window_params = [{transform_indices = @transform_0, window_bounds = array<i64: 1, 64, 32>}, {pipeline_mode = #tpu.pipeline_mode<synchronous>, transform_indices = @transform_1, window_bounds = array<i64: 8, 32>}, {pipeline_mode = #tpu.pipeline_mode<synchronous>, transform_indices = @transform_2, window_bounds = array<i64: 8, 1>}, {transform_indices = @transform_3, window_bounds = array<i64: 1, 8, 64>}]} {
    %c0 = arith.constant 0 : index
    %c0_0 = arith.constant 0 : index
    %c0_1 = arith.constant 0 : index
    %0 = vector.load %arg2[%c0, %c0_0, %c0_1] : memref<1x64x32xf32, #tpu.memory_space<vmem>>, vector<1x64x32xf32>
    %1 = vector.shape_cast %0 : vector<1x64x32xf32> to vector<64x32xf32>
    %c0_2 = arith.constant 0 : index
    %c0_3 = arith.constant 0 : index
    %2 = vector.load %arg3[%c0_2, %c0_3] : memref<8x32xbf16, #tpu.memory_space<vmem>>, vector<8x32xbf16>
    %3 = arith.truncf %1 : vector<64x32xf32> to vector<64x32xbf16>
    %cst = arith.constant dense<0.000000e+00> : vector<8x64xf32>
    %4 = tpu.matmul %2, %3, %cst {dimension_numbers = #tpu.dot_dimension_numbers<[1], [1], [0], [0], [0, 0, 1, 0], [], []>} : vector<8x32xbf16>, vector<64x32xbf16>, vector<8x64xf32> -> vector<8x64xf32>
    %c0_4 = arith.constant 0 : index
    %c0_5 = arith.constant 0 : index
    %5 = vector.load %arg4[%c0_4, %c0_5] : memref<8x1xf32, #tpu.memory_space<vmem>>, vector<8x1xf32>
    %6 = vector.broadcast %5 : vector<8x1xf32> to vector<8x64xf32>
    %7 = arith.addf %4, %6 : vector<8x64xf32>
    %c0_6 = arith.constant 0 : index
    %c0_7 = arith.constant 0 : index
    %c0_8 = arith.constant 0 : index
    %8 = vector.load %arg5[%c0_6, %c0_7, %c0_8] : memref<1x8x64xf32, #tpu.memory_space<vmem>>, vector<1x8x64xf32>
    %9 = vector.shape_cast %8 : vector<1x8x64xf32> to vector<8x64xf32>
    %10 = vector.shape_cast %7 : vector<8x64xf32> to vector<1x8x64xf32>
    tpu.vector_store %arg5[%c0_6, %c0_7, %c0_8], %10 {strides = array<i32>} : memref<1x8x64xf32, #tpu.memory_space<vmem>>, vector<1x8x64xf32>,
    return
  }
  func.func @transform_0(%arg0: i32, %arg1: i32) -> (i32, i32, i32) {
    %c0_i32 = arith.constant 0 : i32
    %c0_i32_0 = arith.constant 0 : i32
    return %arg0, %arg1, %c0_i32 : i32, i32, i32
  }
  func.func @transform_1(%arg0: i32, %arg1: i32) -> (i32, i32) {
    %c0_i32 = arith.constant 0 : i32
    %c0_i32_0 = arith.constant 0 : i32
    %c0_i32_1 = arith.constant 0 : i32
    return %c0_i32, %c0_i32_0 : i32, i32
  }
  func.func @transform_2(%arg0: i32, %arg1: i32) -> (i32, i32) {
    %c0_i32 = arith.constant 0 : i32
    %c0_i32_0 = arith.constant 0 : i32
    %c0_i32_1 = arith.constant 0 : i32
    return %c0_i32, %c0_i32_0 : i32, i32
  }
  func.func @transform_3(%arg0: i32, %arg1: i32) -> (i32, i32, i32) {
    %c0_i32 = arith.constant 0 : i32
    %c0_i32_0 = arith.constant 0 : i32
    return %arg0, %c0_i32, %arg1 : i32, i32, i32
  }
}

</mosaic_0001>

<bundles_post_ra>
// kernel: linear_head_bcn.1
= control target key start
LH: loop header
LB: loop body
LE: loop exit
PB: predicated region body
PF: predicated region fallthrough
CT: control target
= control target key end

     0   :  { %8 = vsyncpa [#allocation3], 0  ;;  %s680_s0 = inlined_call_operand.vmem [shape: f32[2,64,32], index: 0, kind: input, shape index: {}]   ;;  %s681_s1 = inlined_call_operand.vmem [shape: bf16[8,32], index: 1, kind: input, shape index: {}]   ;;  %s682_s2 = inlined_call_operand.vmem [shape: f32[8,1], index: 2, kind: input, shape index: {}]   ;;  %s683_s3 = inlined_call_operand.hbm [shape: f32[2,8,64], index: 3, kind: output, shape index: {}]  }
   0x1   :  { %10 = vsyncpa [#allocation3 + $0x1], 0  ;;  %s558_s12 = smov 0   ;;  %s560_s13 = smov 0  }
   0x2   :  { %s562_s14 = smov 0   ;;  %s564_s15 = smov 0  }
   0x3   :  { %s566_s16 = smov 0   ;;  %s568_s17 = smov 0  }
   0x4 LB: > { %s366_s18 = sadd.s32 4294967295, %s532_s17   ;;  %s367_s19 = sadd.s32 4294967294, %s532_s17   ;;  %s532_s17 = sphi %s568_s17, %s16_s17   ;;  %s528_s16 = sphi %s566_s16, %s690_s16   ;;  %s524_s15 = sphi %s564_s15, %s689_s15   ;;  %s520_s14 = sphi %s562_s14, %s688_s14   ;;  %s516_s13 = sphi %s560_s13, %s687_s13   ;;  %s512_s12 = sphi %s558_s12, %s686_s12  }
   0x5   : > { %s28_s20 = sadd.s32 1, %s528_s16  ;;  %s107_s21 = sadd.s32 1, %s520_s14 }
   0x6   : > { %p30_p0 = scmp.ge.s32.totalorder %s28_s20, 2  ;;  %p117_p1 = scmp.ne.s32.totalorder %s520_s14, %s516_s13 }
   0x7   : > { %p118_p2 = scmp.eq.s32.totalorder %s366_s18, 1  ;;  %p123_p3 = scmp.ne.s32.totalorder %s516_s13, %s512_s12 }
   0x8   : > { %s692_s20 = smov (%p30_p0, %s28_s20), 0  ;;  %p124_p5 = scmp.eq.s32.totalorder %s367_s19, 1 }
   0x9   : > { %p598_p4 = por %p118_p2, %p117_p1  ;;  %s102_s23 = ssub.s32 %s528_s16, %s692_s20 }
   0xa   : > { %p370_p6 = scmp.ge.s32.totalorder %s532_s17, 1  ;;  %p105_p7 = scmp.eq.s32.totalorder %s102_s23, 0 }
   0xb   : > { %p605_p8 = por %p124_p5, %p123_p3  ;;  %p161_p9 = scmp.lt.s32.totalorder %s532_s17, 3 }
   0xc   : > { %s611_s25 = scalar_select %p105_p7, %s520_s14, %s107_s21  }
   0xd   : > { %p162_p10 = pnand %p370_p6, %p161_p9 }
   0xe   : > { %p190_p11 = scmp.lt.s32.totalorder (!%p162_p10), %s524_s15, 1  ;;  %s186_s8 = sand.u32 (!%p162_p10), 1, %s516_s13  }
   0xf   : > { %165 = sbr.rel (%p162_p10) target bundleno = 268 (0x10c), region = 32  ;;  %s371_s9 = sshll.u32 (!%p162_p10), %s186_s8, 3 }
  0x10   : > { %s376_s10 = sshll.u32 (!%p162_p10), %s524_s15, 7  ;;  %s188_s11 = scalar_lea.vmem (!%p162_p10), [#allocation2], %s371_s9 }
  0x11   : > { %s292_s18 = sshll.u32 (!%p162_p10), %s188_s11, 4  ;;  %s634_s23 = scalar_lea.hbm (!%p162_p10), %s683_s3, %s376_s10  ;;  %s636_s18 = int_to_ptr.vmem [resolvable:$true] %s292_s18 }
  0x12   : > { %s278_s26 = scalar_lea.sflag (!%p162_p10), [#allocation3], %s186_s8  ;;  %s537_s27 = smov (!%p162_p10), [#allocation2]  }
  0x14   : > { %v534_v0 = vmov 0.0   ;;  %vm535_vm0 = vmmov 0   ;;  %v213_v1 = vld [vmem:[%s682_s2] sm:$0xff]  ;;  %s191_s28 = scalar_select %p190_p11, %s524_s15, 1  ;;  %v536_v2 = vmov 0   ;;  %vm219_vm1 = vcmask 261120  }
  0x15   : > { %385 = vmatprep.subr.bf16.mxu0 %v534_v0  ;;  %393 = vmatprep.mubr.msk.bf16.mxu0 %vm535_vm0, %v534_v0  ;;  %v208_v19 = vld [vmem:[%s681_s1] sm:$0xf]  ;;  %vm275_vm2 = vcmask 523264   ;;  %s456_s15 = scalar_lea.vmem %s636_s18, 128 }
  0x16   : > { %455 = vset.pattern.permute.xlu0 %v536_v2  ;;  %s379_s29 = sshll.u32 %s191_s28, 6  ;;  %p457_p12 = scmp.ne.s32.totalorder %s636_s18, %s456_s15 }
  0x17   : > { %216 = vperm.xlu0 %455, %v213_v1   ;;  %s197_s5 = scalar_lea.vmem %s680_s0, %s379_s29  ;;  %s460_s28 = sshll.u32 %s537_s27, 4  ;;  %s461_s28 = int_to_ptr.vmem [resolvable:$false] %s460_s28 }
  0x18   : > { %v206_v3 = vld [vmem:[%s197_s5 + $0x30] sm:$0xff]  ;;  %v207_v4 = vld [vmem:[%s197_s5 + $0x38] sm:$0xff]  ;;  %v204_v6 = vld [vmem:[%s197_s5 + $0x20] sm:$0xff]  ;;  %p458_p13 = pnand %p457_p12, %p598_p4  ;;  %s462_s29 = scalar_lea.vmem %s461_s28, 256 }
  0x19   : > { %v212_v5 = vpack.c.bf16 %v207_v4, %v206_v3  ;;  %v205_v7 = vld [vmem:[%s197_s5 + $0x28] sm:$0xff]  ;;  %v202_v11 = vld [vmem:[%s197_s5 + $0x10] sm:$0xff]  ;;  %v203_v12 = vld [vmem:[%s197_s5 + $0x18] sm:$0xff]  ;;  %p463_p1 = scmp.lt.s32.totalorder %s636_s18, %s461_s28  ;;  %p464_p2 = scmp.lt.s32.totalorder %s462_s29, %s456_s15 }
  0x1a   : > { %v211_v9 = vpack.c.bf16 %v205_v7, %v204_v6  ;;  %v210_v13 = vpack.c.bf16 %v203_v12, %v202_v11  ;;  %v200_v15 = vld [vmem:[%s197_s5] sm:$0xff]  ;;  %v201_v16 = vld [vmem:[%s197_s5 + $0x8] sm:$0xff]  ;;  %p459_p0 = pneg %p458_p13 }
  0x1b   : > { %v233_v8 = vsel %vm219_vm1, %v212_v5, 0  ;;  %v209_v17 = vpack.c.bf16 %v201_v16, %v200_v15  ;;  %p465_p3 = por %p464_p2, %p463_p1 }
  0x1c   : > { %386 = vmatpush3.bf16.xpose.msra.mxu0 %v233_v8  ;;  %v230_v10 = vsel %vm219_vm1, %v211_v9, 0  ;;  %v227_v14 = vsel %vm219_vm1, %v210_v13, 0 }
  0x1d   : > { %387 = vmatprep.subr.bf16.mxu0 %v534_v0  ;;  %v224_v18 = vsel %vm219_vm1, %v209_v17, 0  ;;  %p466_p5 = pnand %p465_p3, %p459_p0 }
  0x24   : > { %388 = vmatpush3.bf16.xpose.msra.mxu0 %v230_v10 }
  0x25   : > { %389 = vmatprep.subr.bf16.mxu0 %v534_v0 }
  0x2c   : > { %390 = vmatpush3.bf16.xpose.msra.mxu0 %v227_v14 }
  0x2d   : > { %391 = vmatprep.subr.bf16.mxu0 %v534_v0 }
  0x34   : > { %392 = vmatpush3.bf16.xpose.msra.mxu0 %v224_v18 }
  0x3b   : > { %394 = vmatmul.mubr.msk.bf16.vlgmr.msra.gmra.mxu0 %vm219_vm1, %v208_v19 }
  0x92   : > { %v217_v20 = vpop.permute.xlu0 %216 }
  0xfb   : > { %v269_v21 = vpop.f32.mrf.mxu0 }
  0xfc   : > { %v270_v22 = vadd.f32 %v269_v21, %v217_v20 }
  0xfd   : > { %v395_v23 = vpop.f32.mrf.mxu0 }
  0xfe   : > { %276 = vst.msk [vmem:[%s188_s11] sm:$0xff] %vm275_vm2, %v270_v22 }
  0xff   : > { %v272_v24 = vpop.f32.mrf.mxu0 }
 0x100   : > { %469 = shalt.err (!%p466_p5)
}
 0x101   : > { %s470_s30 = scalar_lea.hbm %s634_s23, 128  ;;  %s474_s6 = scalar_lea.hbm %s683_s3, 256 }
 0x102   : > { %p471_p6 = scmp.ne.s32.totalorder %s634_s23, %s470_s30  ;;  %p475_p10 = scmp.lt.s32.totalorder %s634_s23, %s683_s3 }
 0x103   : > { %p476_p11 = scmp.lt.s32.totalorder %s474_s6, %s470_s30 }
 0x104   : > { %p472_p7 = pnand %p471_p6, %p598_p4 }
 0x105   : > { %p477_p12 = por %p476_p11, %p475_p10 }
 0x106   : > { %p473_p9 = pneg %p472_p7 }
 0x108   : > { %p478_p13 = pnand %p477_p12, %p473_p9 }
 0x10a   : > { %481 = shalt.err (!%p478_p13)
}
 0x10b   : > { %397 = dma.vmem_to_hbm [thread:$0]  (%p598_p4), %s636_s18, 128, %s634_s23, %s278_s26   ;;  %v396_v25 = vpop.f32.mrf.mxu0 }
 0x10c PF: > { %p403_p0 = scmp.ge.s32.totalorder %s532_s17, 2  ;;  %s304_s9 = sand.u32 1, %s512_s12  }
 0x10d   : > { %s305_s10 = scalar_lea.sflag [#allocation3], %s304_s9 }
 0x10e   : > { %p400_p1 = pnand %p403_p0, %p605_p8 }
 0x110   : > { %p401_p2 = pneg %p400_p1 }
 0x112   : > { %507 = dma.done.wait (%p401_p2), %s305_s10, 128  }
 0x113   : > { %509 = vsyncadd (%p401_p2), %s305_s10, 4294967168  ;;  %s16_s17 = sadd.s32 1, %s532_s17   ;;  %s686_s12 = smov %s516_s13 }
 0x114   : > { %p13_p3 = scmp.ge.s32.totalorder %s16_s17, 4   ;;  %s687_s13 = smov %s520_s14 }
 0x115   : > { %s688_s14 = smov %s611_s25  ;;  %s689_s15 = smov %s528_s16 }
 0x116   : > { %s690_s16 = smov %s692_s20  ;;  %15 = sbr.rel (!%p13_p3) target bundleno = 4 (0x4), region = 67 }
 0x11b   :  { %310 = vsyncpa [#allocation3], 1 }
 0x11c   :  { %312 = vsyncpa [#allocation3 + $0x1], 1 }

</bundles_post_ra>
